<compile_context>
chip_gen: v7x
topology: tpu7x:2x2x1
jax: 0.10.0
libtpu: 0.0.40
codegen_flags: <defaults>
</compile_context>

<pallas_src>
import jax
import jax.numpy as jnp
from jax.experimental import pallas as pl
from jax.experimental.pallas import tpu as pltpu

K = 11          # kernel size
PAD = 5         # padding
TH = 8          # row-strip height (== f32 sublane tile; keep at 8)
HS = TH + 2 * PAD                     # 18 rows per halo strip
C_GSX, C_GSX2, C_LOG, C_GS = 18, 18, 8, 4
C_OUT = C_GSX + C_GSX2 + C_LOG + C_GS   # 48


def _gaussian_filter_bank():
    """Deterministic analytic 11x11 filter banks (Gaussian-derivative family)."""
    half = (K - 1) // 2
    yy, xx = jnp.meshgrid(
        jnp.arange(-half, half + 1, dtype=jnp.float32),
        jnp.arange(-half, half + 1, dtype=jnp.float32),
        indexing="ij",
    )

    def gauss(s):
        g = jnp.exp(-(xx ** 2 + yy ** 2) / (2.0 * s ** 2))
        return g / jnp.sum(g)

    def bank(n, fn, lo, hi):
        sigs = jnp.linspace(lo, hi, n)
        return jnp.stack([fn(float(s)) for s in sigs], axis=0)  # (n, K, K)

    gs_x  = bank(C_GSX,  lambda s: -(xx / (s ** 2)) * gauss(s), 0.8, 3.0)
    gs_x2 = bank(C_GSX2, lambda s: ((xx ** 2 - s ** 2) / (s ** 4)) * gauss(s), 0.8, 3.0)
    log   = bank(C_LOG,  lambda s: ((xx ** 2 + yy ** 2 - 2 * s ** 2) / (s ** 4)) * gauss(s), 1.0, 3.0)
    gs    = bank(C_GS,   gauss, 1.0, 2.5)

    w = jnp.concatenate([gs_x, gs_x2, log, gs], axis=0)  # (48, K, K), cat order of forward()
    b = jnp.zeros((C_OUT,), jnp.float32)                 # fixed filter layers: zero bias
    return w.astype(jnp.float32), b


def _build_row_folded_weights(w, b):
    """Pack filters + bias into the row-folded matmul LHS (bf16).

    wall[c*TH + i, kw*HS + r] = w[c, r - i, kw]   if 0 <= r - i < K else 0
    wall[c*TH + i, K*HS]      = b[c]
    so that out[c, i, j] = wall[c*TH+i, :] @ q[:, j] where
    q[kw*HS + r, j] = halo_strip[r, j + kw] and q[K*HS, j] = 1.
    """
    i = jnp.arange(TH)[:, None]                      # (TH, 1)
    r = jnp.arange(HS)[None, :]                      # (1, HS)
    kh = r - i                                       # (TH, HS)
    valid = (kh >= 0) & (kh < K)
    kh_c = jnp.clip(kh, 0, K - 1)
    w4 = w[:, kh_c, :]                               # (C_OUT, TH, HS, K)
    w4 = jnp.where(valid[None, :, :, None], w4, 0.0)
    w4 = jnp.transpose(w4, (0, 1, 3, 2))             # (C_OUT, TH, K, HS)
    wall = w4.reshape(C_OUT * TH, K * HS)
    bias_col = jnp.repeat(b.astype(jnp.float32), TH)[:, None]    # (C_OUT*TH, 1)
    wall = jnp.concatenate([wall, bias_col], axis=1)              # (C_OUT*TH, K*HS+1)
    return wall.astype(jnp.bfloat16)                 # bf16: single MXU pass, half VMEM/DMA


def _lm_conv_kernel(xs_ref, wall_ref, o_ref, q_ref):
    # xs_ref  : (1, 1, HS, Wp)        f32  halo row strip (already zero-padded)
    # wall_ref: (C_OUT*TH, K*HS+1)    bf16 row-folded filter bank + bias column
    # o_ref   : (1, C_OUT, TH, Wout)  f32  NCHW output strip (lane-dense W)
    # q_ref   : (K*HS+1, Wout)        f32  scratch: shifted-row stack + ones row
    hs = xs_ref.shape[2]
    w_out = o_ref.shape[3]

    # Build Q: 11 lane-shifted slab copies read straight from the input ref
    # (no materialized strip value -> flat vreg pressure).
    for kw in range(K):
        q_ref[kw * hs:(kw + 1) * hs, :] = xs_ref[0, 0, :, kw:kw + w_out]
    # Ones row for the bias column (tiny; written per strip for core-sharding safety).
    q_ref[K * hs:K * hs + 1, :] = jnp.ones((1, w_out), jnp.float32)

    # Single-pass bf16 MXU matmul (f32 accumulate) covering all 48 channels x
    # TH rows x W cols of this strip.
    res = jnp.dot(wall_ref[...], q_ref[...].astype(jnp.bfloat16),
                  preferred_element_type=jnp.float32)          # (C_OUT*TH, Wout)

    # res rows are ordered c*TH + i == the NCHW block layout; TH == 8 sublanes
    # so this reshape is a free relayout -> one full-width unmasked store.
    o_ref[...] = res.reshape(o_ref.shape)


def lm_forward(x, w, b):
    """x: (N, 1, H, W) float32 (NCHW like PyTorch) -> (N, 48, H, W)."""
    N, C, H, W = x.shape
    assert C == 1

    H_pad = -(-H // TH) * TH            # round H up to a multiple of the strip height
    W_pad = -(-W // 128) * 128          # lane-dense output width (unmasked vst)
    T = H_pad // TH
    Wp = W_pad + 2 * PAD

    # Zero-padded plane, then halo row strips (N, T, HS, Wp): each strip already
    # carries its +/-PAD halo rows, so the kernel only needs one 18-row slab per step.
    xp = jnp.pad(x[:, 0],
                 ((0, 0), (PAD, PAD + (H_pad - H)), (PAD, PAD + (W_pad - W))))
    rows = jnp.arange(T)[:, None] * TH + jnp.arange(HS)[None, :]   # (T, HS)
    xs = xp[:, rows, :]                                            # (N, T, HS, Wp)

    wall = _build_row_folded_weights(w, b)                         # (C_OUT*TH, K*HS+1) bf16

    out = pl.pallas_call(
        _lm_conv_kernel,
        out_shape=jax.ShapeDtypeStruct((N, C_OUT, H_pad, W_pad), jnp.float32),
        grid_spec=pltpu.PrefetchScalarGridSpec(
            num_scalar_prefetch=0,
            grid=(N, T),
            in_specs=[
                # One halo row strip per grid step -> bounded input VMEM on v7x.
                pl.BlockSpec((1, 1, HS, Wp), lambda n, t: (n, t, 0, 0)),
                # Constant filter bank (bf16, ~150 KB).
                pl.BlockSpec((C_OUT * TH, K * HS + 1), lambda n, t: (0, 0)),
            ],
            out_specs=pl.BlockSpec((1, C_OUT, TH, W_pad), lambda n, t: (n, 0, t, 0)),
            scratch_shapes=[pltpu.VMEM((K * HS + 1, W_pad), jnp.float32)],
        ),
        compiler_params=pltpu.CompilerParams(
            dimension_semantics=("parallel", "parallel"),
        ),
    )(xs, wall)

    return out[:, :, :H, :W]


if __name__ == "__main__":
    key = jax.random.PRNGKey(0)
    x = jax.random.normal(key, (2, 1, 16, 16), dtype=jnp.float32)
    w, b = _gaussian_filter_bank()

    y = jax.jit(lm_forward)(x, w, b)
    y = jax.block_until_ready(y)
    assert y.shape == (2, C_OUT, 16, 16), y.shape

    # Reference check against XLA conv (cross-correlation, same as torch.Conv2d).
    # Tolerance accounts for the single-pass bf16 MXU matmul vs the f32 reference.
    y_ref = jax.lax.conv_general_dilated(
        x, w.reshape(C_OUT, 1, K, K),
        window_strides=(1, 1), padding=((PAD, PAD), (PAD, PAD)),
        dimension_numbers=("NCHW", "OIHW", "NCHW"),
        precision=jax.lax.Precision.HIGHEST,
    ) + b.reshape(1, C_OUT, 1, 1)
    err = float(jnp.max(jnp.abs(y - y_ref)))
    assert jnp.allclose(y, y_ref, atol=2e-2, rtol=2e-2), err

    print("KERNEL_OK")
</pallas_src>

<mosaic_0001>
module attributes {stable_mosaic.version = 11 : i64} {
  func.func @_lm_conv_kernel(%arg0: i32, %arg1: i32, %arg2: memref<1x1x18x138xf32, #tpu.memory_space<vmem>>, %arg3: memref<384x199xbf16, #tpu.memory_space<vmem>>, %arg4: memref<1x48x8x128xf32, #tpu.memory_space<vmem>>, %arg5: memref<199x128xf32, #tpu.memory_space<vmem>>) attributes {dimension_semantics = [#tpu.dimension_semantics<parallel>, #tpu.dimension_semantics<parallel>], iteration_bounds = array<i64: 2, 2>, scalar_prefetch = 0 : i64, scratch_operands = 1 : i64, tpu.core_type = #tpu.core_type<tc>, window_params = [{transform_indices = @transform_0, window_bounds = array<i64: 1, 1, 18, 138>}, {pipeline_mode = #tpu.pipeline_mode<synchronous>, transform_indices = @transform_1, window_bounds = array<i64: 384, 199>}, {transform_indices = @transform_2, window_bounds = array<i64: 1, 48, 8, 128>}]} {
    %c0 = arith.constant 0 : index
    %c0_0 = arith.constant 0 : index
    %c0_1 = arith.constant 0 : index
    %c0_2 = arith.constant 0 : index
    %0 = vector.load %arg2[%c0, %c0_0, %c0_1, %c0_2] : memref<1x1x18x138xf32, #tpu.memory_space<vmem>>, vector<1x1x18x128xf32>
    %1 = vector.shape_cast %0 : vector<1x1x18x128xf32> to vector<18x128xf32>
    %c0_3 = arith.constant 0 : index
    %c0_4 = arith.constant 0 : index
    %2 = vector.load %arg5[%c0_3, %c0_4] : memref<199x128xf32, #tpu.memory_space<vmem>>, vector<18x128xf32>
    tpu.vector_store %arg5[%c0_3, %c0_4], %1 {strides = array<i32>} : memref<199x128xf32, #tpu.memory_space<vmem>>, vector<18x128xf32>,
    %c0_5 = arith.constant 0 : index
    %c0_6 = arith.constant 0 : index
    %c0_7 = arith.constant 0 : index
    %c1 = arith.constant 1 : index
    %3 = vector.load %arg2[%c0_5, %c0_6, %c0_7, %c1] : memref<1x1x18x138xf32, #tpu.memory_space<vmem>>, vector<1x1x18x128xf32>
    %4 = vector.shape_cast %3 : vector<1x1x18x128xf32> to vector<18x128xf32>
    %c18 = arith.constant 18 : index
    %c0_8 = arith.constant 0 : index
    %5 = vector.load %arg5[%c18, %c0_8] : memref<199x128xf32, #tpu.memory_space<vmem>>, vector<18x128xf32>
    tpu.vector_store %arg5[%c18, %c0_8], %4 {strides = array<i32>} : memref<199x128xf32, #tpu.memory_space<vmem>>, vector<18x128xf32>,
    %c0_9 = arith.constant 0 : index
    %c0_10 = arith.constant 0 : index
    %c0_11 = arith.constant 0 : index
    %c2 = arith.constant 2 : index
    %6 = vector.load %arg2[%c0_9, %c0_10, %c0_11, %c2] : memref<1x1x18x138xf32, #tpu.memory_space<vmem>>, vector<1x1x18x128xf32>
    %7 = vector.shape_cast %6 : vector<1x1x18x128xf32> to vector<18x128xf32>
    %c36 = arith.constant 36 : index
    %c0_12 = arith.constant 0 : index
    %8 = vector.load %arg5[%c36, %c0_12] : memref<199x128xf32, #tpu.memory_space<vmem>>, vector<18x128xf32>
    tpu.vector_store %arg5[%c36, %c0_12], %7 {strides = array<i32>} : memref<199x128xf32, #tpu.memory_space<vmem>>, vector<18x128xf32>,
    %c0_13 = arith.constant 0 : index
    %c0_14 = arith.constant 0 : index
    %c0_15 = arith.constant 0 : index
    %c3 = arith.constant 3 : index
    %9 = vector.load %arg2[%c0_13, %c0_14, %c0_15, %c3] : memref<1x1x18x138xf32, #tpu.memory_space<vmem>>, vector<1x1x18x128xf32>
    %10 = vector.shape_cast %9 : vector<1x1x18x128xf32> to vector<18x128xf32>
    %c54 = arith.constant 54 : index
    %c0_16 = arith.constant 0 : index
    %11 = vector.load %arg5[%c54, %c0_16] : memref<199x128xf32, #tpu.memory_space<vmem>>, vector<18x128xf32>
    tpu.vector_store %arg5[%c54, %c0_16], %10 {strides = array<i32>} : memref<199x128xf32, #tpu.memory_space<vmem>>, vector<18x128xf32>,
    %c0_17 = arith.constant 0 : index
    %c0_18 = arith.constant 0 : index
    %c0_19 = arith.constant 0 : index
    %c4 = arith.constant 4 : index
    %12 = vector.load %arg2[%c0_17, %c0_18, %c0_19, %c4] : memref<1x1x18x138xf32, #tpu.memory_space<vmem>>, vector<1x1x18x128xf32>
    %13 = vector.shape_cast %12 : vector<1x1x18x128xf32> to vector<18x128xf32>
    %c72 = arith.constant 72 : index
    %c0_20 = arith.constant 0 : index
    %14 = vector.load %arg5[%c72, %c0_20] : memref<199x128xf32, #tpu.memory_space<vmem>>, vector<18x128xf32>
    tpu.vector_store %arg5[%c72, %c0_20], %13 {strides = array<i32>} : memref<199x128xf32, #tpu.memory_space<vmem>>, vector<18x128xf32>,
    %c0_21 = arith.constant 0 : index
    %c0_22 = arith.constant 0 : index
    %c0_23 = arith.constant 0 : index
    %c5 = arith.constant 5 : index
    %15 = vector.load %arg2[%c0_21, %c0_22, %c0_23, %c5] : memref<1x1x18x138xf32, #tpu.memory_space<vmem>>, vector<1x1x18x128xf32>
    %16 = vector.shape_cast %15 : vector<1x1x18x128xf32> to vector<18x128xf32>
    %c90 = arith.constant 90 : index
    %c0_24 = arith.constant 0 : index
    %17 = vector.load %arg5[%c90, %c0_24] : memref<199x128xf32, #tpu.memory_space<vmem>>, vector<18x128xf32>
    tpu.vector_store %arg5[%c90, %c0_24], %16 {strides = array<i32>} : memref<199x128xf32, #tpu.memory_space<vmem>>, vector<18x128xf32>,
    %c0_25 = arith.constant 0 : index
    %c0_26 = arith.constant 0 : index
    %c0_27 = arith.constant 0 : index
    %c6 = arith.constant 6 : index
    %18 = vector.load %arg2[%c0_25, %c0_26, %c0_27, %c6] : memref<1x1x18x138xf32, #tpu.memory_space<vmem>>, vector<1x1x18x128xf32>
    %19 = vector.shape_cast %18 : vector<1x1x18x128xf32> to vector<18x128xf32>
    %c108 = arith.constant 108 : index
    %c0_28 = arith.constant 0 : index
    %20 = vector.load %arg5[%c108, %c0_28] : memref<199x128xf32, #tpu.memory_space<vmem>>, vector<18x128xf32>
    tpu.vector_store %arg5[%c108, %c0_28], %19 {strides = array<i32>} : memref<199x128xf32, #tpu.memory_space<vmem>>, vector<18x128xf32>,
    %c0_29 = arith.constant 0 : index
    %c0_30 = arith.constant 0 : index
    %c0_31 = arith.constant 0 : index
    %c7 = arith.constant 7 : index
    %21 = vector.load %arg2[%c0_29, %c0_30, %c0_31, %c7] : memref<1x1x18x138xf32, #tpu.memory_space<vmem>>, vector<1x1x18x128xf32>
    %22 = vector.shape_cast %21 : vector<1x1x18x128xf32> to vector<18x128xf32>
    %c126 = arith.constant 126 : index
    %c0_32 = arith.constant 0 : index
    %23 = vector.load %arg5[%c126, %c0_32] : memref<199x128xf32, #tpu.memory_space<vmem>>, vector<18x128xf32>
    tpu.vector_store %arg5[%c126, %c0_32], %22 {strides = array<i32>} : memref<199x128xf32, #tpu.memory_space<vmem>>, vector<18x128xf32>,
    %c0_33 = arith.constant 0 : index
    %c0_34 = arith.constant 0 : index
    %c0_35 = arith.constant 0 : index
    %c8 = arith.constant 8 : index
    %24 = vector.load %arg2[%c0_33, %c0_34, %c0_35, %c8] : memref<1x1x18x138xf32, #tpu.memory_space<vmem>>, vector<1x1x18x128xf32>
    %25 = vector.shape_cast %24 : vector<1x1x18x128xf32> to vector<18x128xf32>
    %c144 = arith.constant 144 : index
    %c0_36 = arith.constant 0 : index
    %26 = vector.load %arg5[%c144, %c0_36] : memref<199x128xf32, #tpu.memory_space<vmem>>, vector<18x128xf32>
    tpu.vector_store %arg5[%c144, %c0_36], %25 {strides = array<i32>} : memref<199x128xf32, #tpu.memory_space<vmem>>, vector<18x128xf32>,
    %c0_37 = arith.constant 0 : index
    %c0_38 = arith.constant 0 : index
    %c0_39 = arith.constant 0 : index
    %c9 = arith.constant 9 : index
    %27 = vector.load %arg2[%c0_37, %c0_38, %c0_39, %c9] : memref<1x1x18x138xf32, #tpu.memory_space<vmem>>, vector<1x1x18x128xf32>
    %28 = vector.shape_cast %27 : vector<1x1x18x128xf32> to vector<18x128xf32>
    %c162 = arith.constant 162 : index
    %c0_40 = arith.constant 0 : index
    %29 = vector.load %arg5[%c162, %c0_40] : memref<199x128xf32, #tpu.memory_space<vmem>>, vector<18x128xf32>
    tpu.vector_store %arg5[%c162, %c0_40], %28 {strides = array<i32>} : memref<199x128xf32, #tpu.memory_space<vmem>>, vector<18x128xf32>,
    %c0_41 = arith.constant 0 : index
    %c0_42 = arith.constant 0 : index
    %c0_43 = arith.constant 0 : index
    %c10 = arith.constant 10 : index
    %30 = vector.load %arg2[%c0_41, %c0_42, %c0_43, %c10] : memref<1x1x18x138xf32, #tpu.memory_space<vmem>>, vector<1x1x18x128xf32>
    %31 = vector.shape_cast %30 : vector<1x1x18x128xf32> to vector<18x128xf32>
    %c180 = arith.constant 180 : index
    %c0_44 = arith.constant 0 : index
    %32 = vector.load %arg5[%c180, %c0_44] : memref<199x128xf32, #tpu.memory_space<vmem>>, vector<18x128xf32>
    tpu.vector_store %arg5[%c180, %c0_44], %31 {strides = array<i32>} : memref<199x128xf32, #tpu.memory_space<vmem>>, vector<18x128xf32>,
    %cst = arith.constant 1.000000e+00 : f32
    %33 = vector.broadcast %cst : f32 to vector<1x128xf32>
    %c198 = arith.constant 198 : index
    %c0_45 = arith.constant 0 : index
    %34 = vector.load %arg5[%c198, %c0_45] : memref<199x128xf32, #tpu.memory_space<vmem>>, vector<1x128xf32>
    tpu.vector_store %arg5[%c198, %c0_45], %33 {strides = array<i32>} : memref<199x128xf32, #tpu.memory_space<vmem>>, vector<1x128xf32>,
    %c0_46 = arith.constant 0 : index
    %c0_47 = arith.constant 0 : index
    %35 = vector.load %arg3[%c0_46, %c0_47] : memref<384x199xbf16, #tpu.memory_space<vmem>>, vector<384x199xbf16>
    %c0_48 = arith.constant 0 : index
    %c0_49 = arith.constant 0 : index
    %36 = vector.load %arg5[%c0_48, %c0_49] : memref<199x128xf32, #tpu.memory_space<vmem>>, vector<199x128xf32>
    %37 = arith.truncf %36 : vector<199x128xf32> to vector<199x128xbf16>
    %cst_50 = arith.constant dense<0.000000e+00> : vector<384x128xf32>
    %38 = tpu.matmul %35, %37, %cst_50 {dimension_numbers = #tpu.dot_dimension_numbers<[1], [0], [0], [1], [0, 0, 1, 1], [], []>} : vector<384x199xbf16>, vector<199x128xbf16>, vector<384x128xf32> -> vector<384x128xf32>
    %39 = vector.shape_cast %38 : vector<384x128xf32> to vector<1x48x8x128xf32>
    %c0_51 = arith.constant 0 : index
    %c0_52 = arith.constant 0 : index
    %c0_53 = arith.constant 0 : index
    %c0_54 = arith.constant 0 : index
    %40 = vector.load %arg4[%c0_51, %c0_52, %c0_53, %c0_54] : memref<1x48x8x128xf32, #tpu.memory_space<vmem>>, vector<1x48x8x128xf32>
    tpu.vector_store %arg4[%c0_51, %c0_52, %c0_53, %c0_54], %39 {strides = array<i32>} : memref<1x48x8x128xf32, #tpu.memory_space<vmem>>, vector<1x48x8x128xf32>,
    return
  }
  func.func @transform_0(%arg0: i32, %arg1: i32) -> (i32, i32, i32, i32) {
    %c0_i32 = arith.constant 0 : i32
    %c0_i32_0 = arith.constant 0 : i32
    %c0_i32_1 = arith.constant 0 : i32
    return %arg0, %arg1, %c0_i32, %c0_i32_0 : i32, i32, i32, i32
  }
  func.func @transform_1(%arg0: i32, %arg1: i32) -> (i32, i32) {
    %c0_i32 = arith.constant 0 : i32
    %c0_i32_0 = arith.constant 0 : i32
    %c0_i32_1 = arith.constant 0 : i32
    return %c0_i32, %c0_i32_0 : i32, i32
  }
  func.func @transform_2(%arg0: i32, %arg1: i32) -> (i32, i32, i32, i32) {
    %c0_i32 = arith.constant 0 : i32
    %c0_i32_0 = arith.constant 0 : i32
    %c0_i32_1 = arith.constant 0 : i32
    return %arg0, %c0_i32, %arg1, %c0_i32_0 : i32, i32, i32, i32
  }
}

</mosaic_0001>

<bundles_post_ra>
// kernel: lm_forward.1
= control target key start
LH: loop header
LB: loop body
LE: loop exit
PB: predicated region body
PF: predicated region fallthrough
CT: control target
= control target key end

     0   :  { %s1809_s9 = smov 0   ;;  %s1811_s10 = smov 0   ;;  %s2347_s0 = inlined_call_operand.vmem [shape: f32[2,2,18,138], index: 0, kind: input, shape index: {}]   ;;  %s2348_s1 = inlined_call_operand.vmem [shape: bf16[384,199], index: 1, kind: input, shape index: {}]   ;;  %s2349_s2 = inlined_call_operand.vmem [shape: f32[2,48,16,128], index: 2, kind: output, shape index: {}]  }
   0x1   :  { %s1813_s11 = smov 0   ;;  %s1815_s12 = smov 0  }
   0x2   :  { %s1817_s13 = smov 0   ;;  %s1819_s14 = smov 0  }
   0x3   :  { %s1821_s15 = smov 0  }
   0x4 LB: > { %s21_s16 = sadd.s32 1, %s1771_s13  ;;  %s24_s17 = sadd.s32 1, %s1775_s14  ;;  %s1779_s15 = sphi %s1821_s15, %s12_s15   ;;  %s1775_s14 = sphi %s1819_s14, %s2356_s14   ;;  %s1771_s13 = sphi %s1817_s13, %s2355_s13   ;;  %s1767_s12 = sphi %s1815_s12, %s2354_s12   ;;  %s1763_s11 = sphi %s1813_s11, %s2353_s11   ;;  %s1759_s10 = sphi %s1811_s10, %s2352_s10   ;;  %s1755_s9 = sphi %s1809_s9, %s2351_s9  }
   0x5   : > { %p22_p0 = scmp.ge.s32.totalorder %s21_s16, 2  ;;  %s1473_s18 = sadd.s32 4294967295, %s1779_s15  }
   0x6   : > { %p92_p1 = scmp.ne.s32.totalorder %s1759_s10, %s1755_s9  ;;  %p93_p2 = scmp.eq.s32.totalorder %s1473_s18, 3 }
   0x7   : > { %s2358_s16 = smov (%p22_p0, %s21_s16), 0  ;;  %s2360_s17 = smov (!%p22_p0, %s24_s17), %s1775_s14 }
   0x8   : > { %s78_s19 = ssub.s32 %s1771_s13, %s2358_s16  ;;  %p26_p3 = scmp.ge.s32.totalorder %s2360_s17, 2 }
   0x9   : > { %p1477_p4 = scmp.ge.s32.totalorder %s1779_s15, 1  ;;  %p1855_p5 = por %p93_p2, %p92_p1 }
   0xa   : > { %p132_p6 = scmp.lt.s32.totalorder %s1779_s15, 5  ;;  %s2362_s17 = smov (%p26_p3, %s2360_s17), 0 }
   0xb   : > { %s77_s21 = ssub.s32 %s1775_s14, %s2362_s17  ;;  %s82_s23 = sadd.s32 1, %s1759_s10 }
   0xc   : > { %p133_p7 = pnand %p1477_p4, %p132_p6  ;;  %s79_s22 = sor.u32 %s78_s19, %s77_s21 }
   0xd   : > { %p80_p8 = scmp.eq.s32.totalorder %s79_s22, 0  ;;  %p157_p9 = scmp.lt.s32.totalorder (!%p133_p7), %s1767_s12, 1  ;;  %v1781_v0 = vmov (!%p133_p7), 0   ;;  %v1791_v25 = vmov (!%p133_p7), 1.0   ;;  %vm197_vm0 = vcmask (!%p133_p7), 1039360   ;;  %vm816_vm1 = vcmask (!%p133_p7), 580608  }
   0xe   : > { %136 = sbr.rel (%p133_p7) target bundleno = 589 (0x24d), region = 28  ;;  %p159_p10 = scmp.lt.s32.totalorder (!%p133_p7), %s1763_s11, 1  ;;  %896 = vmatprep.subr.bf16.mxu0 (!%p133_p7), %v1781_v0  ;;  %1554 = vmatprep.subr.bf16.mxu1 (!%p133_p7), %v1781_v0  ;;  %513 = vst [vmem:[#allocation2 + $0xc6] sm:$0x1] (!%p133_p7), %v1791_v25  ;;  %v1655_v30 = vld [vmem:[%s2348_s1 + $0x4] ss:$8 sps:$4 sm:$0xff] (!%p133_p7)  }
   0xf   : > { %s1866_s24 = scalar_select %p80_p8, %s1759_s10, %s82_s23  }
  0x10   : > { %s1782_s6 = smov (!%p133_p7), 127   ;;  %s1783_s7 = smov (!%p133_p7), 126   ;;  %v1658_v31 = vld [vmem:[%s2348_s1 + $0xc4] ss:$8 sps:$4 sm:$0xff] (!%p133_p7)   ;;  %1527 = vmatprep.mubr.msk.bf16.mxu0 (!%p133_p7), %vm816_vm1, %v1655_v30  ;;  %vm231_vm2 = vcmask (!%p133_p7), 1031168   ;;  %vm265_vm3 = vcmask (!%p133_p7), 1022976  }
  0x11   : > { %s1784_s8 = smov (!%p133_p7), 125   ;;  %s1785_s18 = smov (!%p133_p7), 124   ;;  %1539 = vmatprep.mubr.msk.bf16.mxu1 (!%p133_p7), %vm816_vm1, %v1658_v31  ;;  %vm299_vm4 = vcmask (!%p133_p7), 1014784   ;;  %vm333_vm5 = vcmask (!%p133_p7), 1006592   ;;  %vm367_vm6 = vcmask (!%p133_p7), 998400   ;;  %vm401_vm7 = vcmask (!%p133_p7), 990208  }
  0x12   : > { %s1786_s19 = smov (!%p133_p7), 123   ;;  %s1787_s21 = smov (!%p133_p7), 122   ;;  %vm435_vm8 = vcmask (!%p133_p7), 982016   ;;  %vm469_vm9 = vcmask (!%p133_p7), 973824   ;;  %vm503_vm10 = vcmask (!%p133_p7), 965632   ;;  %vm889_vm11 = vcmask (!%p133_p7), 1042432  }
  0x13   : > { %s1788_s22 = smov (!%p133_p7), 121   ;;  %s1789_s23 = smov (!%p133_p7), 120   ;;  %vm890_vm12 = vcmask (!%p133_p7), 1043456  }
  0x15   : > { %s158_s25 = scalar_select %p157_p9, %s1767_s12, 1 }
  0x16   : > { %s160_s26 = scalar_select %p159_p10, %s1763_s11, 1 }
  0x17   : > { %s1582_s27 = smul.u32 12, %s158_s25  ;;  %s1790_s25 = smov 119  }
  0x18   : > { %s1581_s28 = smul.u32 6, %s160_s26  ;;  %s1792_s26 = smov 118  }
  0x1a   : > { %s163_s29 = sadd.s32 %s1582_s27, %s1581_s28 }
  0x1b   : > { %s1478_s30 = sshll.u32 %s163_s29, 3 }
  0x1c   : > { %s1877_s5 = scalar_lea.vmem %s2347_s0, %s1478_s30 }
  0x1d   : > { %v1880_v1 = vld [vmem:[%s1877_s5 + $0x10] sm:$0xff]  ;;  %v1883_v2 = vld [vmem:[%s1877_s5] sm:$0xff]  ;;  %v1890_v4 = vld [vmem:[%s1877_s5 + $0x18] sm:$0xff] }
  0x1e   : > { %189 = vrot.lane.b32.xlu1 %v1880_v1, %s1782_s6  ;;  %185 = vrot.lane.b32.xlu0 %v1883_v2, %s1782_s6  ;;  %v587_v3 = vpack.c.bf16 %v1880_v1, %v1883_v2  ;;  %v1893_v5 = vld [vmem:[%s1877_s5 + $0x8] sm:$0xff]  ;;  %v177_v7 = vld [vmem:[%s1877_s5 + $0x20] sm:$0x3] }
  0x1f   : > { %v178_v6 = vld [vmem:[%s1877_s5 + $0x28] sm:$0x3]  ;;  %v169_v8 = vld [vmem:[%s1877_s5 + $0x20] sm:$0x3] }
  0x20   : > { %897 = vmatpush1.bf16.msra.mxu0 %v587_v3  ;;  %1567 = vmatpush1.bf16.msra.mxu1 %v587_v3  ;;  %172 = vst [vmem:[#allocation2 + $0x10] sm:$0x3] %v169_v8  ;;  %v212_v9 = vld [vmem:[%s1877_s5 + $0x28] sm:$0x3]  ;;  %v211_v10 = vld [vmem:[%s1877_s5 + $0x20] sm:$0x3] }
  0x21   : > { %898 = vmatprep.subr.bf16.mxu0 %v1781_v0  ;;  %1555 = vmatprep.subr.bf16.mxu1 %v1781_v0  ;;  %v246_v11 = vld [vmem:[%s1877_s5 + $0x28] sm:$0x3]  ;;  %v245_v12 = vld [vmem:[%s1877_s5 + $0x20] sm:$0x3] }
  0x22   : > { %191 = vrot.lane.b32.xlu1 %v1890_v4, %s1782_s6  ;;  %187 = vrot.lane.b32.xlu0 %v1893_v5, %s1782_s6  ;;  %v280_v13 = vld [vmem:[%s1877_s5 + $0x28] sm:$0x3]  ;;  %v279_v14 = vld [vmem:[%s1877_s5 + $0x20] sm:$0x3] }
  0x23   : > { %v314_v15 = vld [vmem:[%s1877_s5 + $0x28] sm:$0x3]  ;;  %v313_v16 = vld [vmem:[%s1877_s5 + $0x20] sm:$0x3] }
  0x24   : > { %v348_v17 = vld [vmem:[%s1877_s5 + $0x28] sm:$0x3]  ;;  %v347_v18 = vld [vmem:[%s1877_s5 + $0x20] sm:$0x3] }
  0x25   : > { %v382_v19 = vld [vmem:[%s1877_s5 + $0x28] sm:$0x3]  ;;  %v381_v20 = vld [vmem:[%s1877_s5 + $0x20] sm:$0x3] }
  0x26   : > { %195 = vrot.lane.b32.xlu1 %v178_v6, %s1782_s6  ;;  %193 = vrot.lane.b32.xlu0 %v177_v7, %s1782_s6  ;;  %v416_v21 = vld [vmem:[%s1877_s5 + $0x28] sm:$0x3]  ;;  %v415_v22 = vld [vmem:[%s1877_s5 + $0x20] sm:$0x3] }
  0x27   : > { %v450_v23 = vld [vmem:[%s1877_s5 + $0x28] sm:$0x3]  ;;  %v449_v24 = vld [vmem:[%s1877_s5 + $0x20] sm:$0x3] }
  0x28   : > { %v484_v26 = vld [vmem:[%s1877_s5 + $0x28] sm:$0x3]  ;;  %v483_v27 = vld [vmem:[%s1877_s5 + $0x20] sm:$0x3] }
  0x2a   : > { %221 = vrot.lane.b32.xlu1 %v1893_v5, %s1783_s7  ;;  %219 = vrot.lane.b32.xlu0 %v1883_v2, %s1783_s7 }
  0x2e   : > { %225 = vrot.lane.b32.xlu1 %v1890_v4, %s1783_s7  ;;  %223 = vrot.lane.b32.xlu0 %v1880_v1, %s1783_s7 }
  0x32   : > { %229 = vrot.lane.b32.xlu1 %v212_v9, %s1783_s7  ;;  %227 = vrot.lane.b32.xlu0 %v211_v10, %s1783_s7 }
  0x36   : > { %255 = vrot.lane.b32.xlu1 %v1893_v5, %s1784_s8  ;;  %253 = vrot.lane.b32.xlu0 %v1883_v2, %s1784_s8 }
  0x3a   : > { %259 = vrot.lane.b32.xlu1 %v1890_v4, %s1784_s8  ;;  %257 = vrot.lane.b32.xlu0 %v1880_v1, %s1784_s8 }
  0x3e   : > { %263 = vrot.lane.b32.xlu1 %v246_v11, %s1784_s8  ;;  %261 = vrot.lane.b32.xlu0 %v245_v12, %s1784_s8 }
  0x42   : > { %289 = vrot.lane.b32.xlu1 %v1893_v5, %s1785_s18  ;;  %287 = vrot.lane.b32.xlu0 %v1883_v2, %s1785_s18 }
  0x46   : > { %293 = vrot.lane.b32.xlu1 %v1890_v4, %s1785_s18  ;;  %291 = vrot.lane.b32.xlu0 %v1880_v1, %s1785_s18 }
  0x4a   : > { %297 = vrot.lane.b32.xlu1 %v280_v13, %s1785_s18  ;;  %295 = vrot.lane.b32.xlu0 %v279_v14, %s1785_s18 }
  0x4e   : > { %323 = vrot.lane.b32.xlu1 %v1893_v5, %s1786_s19  ;;  %321 = vrot.lane.b32.xlu0 %v1883_v2, %s1786_s19 }
  0x52   : > { %327 = vrot.lane.b32.xlu1 %v1890_v4, %s1786_s19  ;;  %325 = vrot.lane.b32.xlu0 %v1880_v1, %s1786_s19 }
  0x56   : > { %331 = vrot.lane.b32.xlu1 %v314_v15, %s1786_s19  ;;  %329 = vrot.lane.b32.xlu0 %v313_v16, %s1786_s19  ;;  %s154_s19 = sand.u32 1, %s1755_s9   ;;  %s1583_s9 = smul.u32 (%p1855_p5), 96, %s1767_s12 }
  0x58   : > { %s1177_s20 = sadd.s32 (%p1855_p5), %s1763_s11, %s1583_s9 }
  0x5a   : > { %357 = vrot.lane.b32.xlu1 %v1893_v5, %s1787_s21  ;;  %355 = vrot.lane.b32.xlu0 %v1883_v2, %s1787_s21 }
  0x5e   : > { %361 = vrot.lane.b32.xlu1 %v1890_v4, %s1787_s21  ;;  %359 = vrot.lane.b32.xlu0 %v1880_v1, %s1787_s21 }
  0x62   : > { %365 = vrot.lane.b32.xlu1 %v348_v17, %s1787_s21  ;;  %363 = vrot.lane.b32.xlu0 %v347_v18, %s1787_s21  ;;  %s1580_s21 = smul.u32 384, %s154_s19 }
  0x66   : > { %391 = vrot.lane.b32.xlu1 %v1893_v5, %s1788_s22  ;;  %389 = vrot.lane.b32.xlu0 %v1883_v2, %s1788_s22 }
  0x6a   : > { %395 = vrot.lane.b32.xlu1 %v1890_v4, %s1788_s22  ;;  %393 = vrot.lane.b32.xlu0 %v1880_v1, %s1788_s22 }
  0x6e   : > { %399 = vrot.lane.b32.xlu1 %v382_v19, %s1788_s22  ;;  %397 = vrot.lane.b32.xlu0 %v381_v20, %s1788_s22  ;;  %s2171_s22 = scalar_lea.vmem [#allocation3], %s1580_s21 }
  0x72   : > { %425 = vrot.lane.b32.xlu1 %v1893_v5, %s1789_s23  ;;  %423 = vrot.lane.b32.xlu0 %v1883_v2, %s1789_s23 }
  0x76   : > { %429 = vrot.lane.b32.xlu1 %v1890_v4, %s1789_s23  ;;  %427 = vrot.lane.b32.xlu0 %v1880_v1, %s1789_s23 }
  0x7a   : > { %433 = vrot.lane.b32.xlu1 %v416_v21, %s1789_s23  ;;  %431 = vrot.lane.b32.xlu0 %v415_v22, %s1789_s23  ;;  %s1551_s23 = sshll.u32 (%p1855_p5), %s1177_s20, 3 }
  0x7b   : > { %s2240_s12 = scalar_lea.vmem (%p1855_p5), %s2349_s2, %s1551_s23 }
  0x7e   : > { %459 = vrot.lane.b32.xlu1 %v1893_v5, %s1790_s25  ;;  %457 = vrot.lane.b32.xlu0 %v1883_v2, %s1790_s25 }
  0x82   : > { %463 = vrot.lane.b32.xlu1 %v1890_v4, %s1790_s25  ;;  %461 = vrot.lane.b32.xlu0 %v1880_v1, %s1790_s25 }
  0x86   : > { %467 = vrot.lane.b32.xlu1 %v450_v23, %s1790_s25  ;;  %465 = vrot.lane.b32.xlu0 %v449_v24, %s1790_s25 }
  0x8a   : > { %493 = vrot.lane.b32.xlu1 %v1893_v5, %s1792_s26  ;;  %491 = vrot.lane.b32.xlu0 %v1883_v2, %s1792_s26 }
  0x8e   : > { %497 = vrot.lane.b32.xlu1 %v1890_v4, %s1792_s26  ;;  %495 = vrot.lane.b32.xlu0 %v1880_v1, %s1792_s26 }
  0x90   : > { %v190_v28 = vpop.permute.xlu1 %189  ;;  %v186_v29 = vpop.permute.xlu0 %185 }
  0x92   : > { %501 = vrot.lane.b32.xlu1 %v484_v26, %s1792_s26  ;;  %499 = vrot.lane.b32.xlu0 %v483_v27, %s1792_s26 }
  0x94   : > { %v192_v32 = vpop.permute.xlu1 %191  ;;  %v188_v33 = vpop.permute.xlu0 %187 }
  0x95   : > { %v199_v34 = vsel %vm197_vm0, %v190_v28, %v192_v32  ;;  %v198_v35 = vsel %vm197_vm0, %v186_v29, %v188_v33 }
  0x96   : > { %205 = vst [vmem:[#allocation2 + $0x1a] sm:$0xff] %v199_v34  ;;  %204 = vst [vmem:[#allocation2 + $0x12] sm:$0xff] %v198_v35 }
  0x98   : > { %v196_v36 = vpop.permute.xlu1 %195  ;;  %v194_v37 = vpop.permute.xlu0 %193 }
  0x99   : > { %v200_v38 = vsel %vm197_vm0, %v194_v37, %v196_v36 }
  0x9a   : > { %206 = vst [vmem:[#allocation2 + $0x22] sm:$0x3] %v200_v38 }
  0x9c   : > { %v222_v39 = vpop.permute.xlu1 %221  ;;  %v220_v40 = vpop.permute.xlu0 %219 }
  0x9d   : > { %v232_v41 = vsel %vm231_vm2, %v220_v40, %v222_v39  ;;  %v564_v42 = vld [vmem:[#allocation2 + $0x10] sm:$0xff]  ;;  %v565_v43 = vld [vmem:[#allocation2 + $0x18] sm:$0xff] }
  0x9e   : > { %238 = vst [vmem:[#allocation2 + $0x24] sm:$0xff] %v232_v41  ;;  %v588_v44 = vpack.c.bf16 %v565_v43, %v564_v42 }
  0xa0   : > { %v226_v45 = vpop.permute.xlu1 %225  ;;  %v224_v46 = vpop.permute.xlu0 %223  ;;  %899 = vmatpush1.bf16.msra.mxu0 %v588_v44  ;;  %1568 = vmatpush1.bf16.msra.mxu1 %v588_v44 }
  0xa1   : > { %v233_v47 = vsel %vm231_vm2, %v224_v46, %v226_v45  ;;  %900 = vmatprep.subr.bf16.mxu0 %v1781_v0  ;;  %1556 = vmatprep.subr.bf16.mxu1 %v1781_v0 }
  0xa2   : > { %239 = vst [vmem:[#allocation2 + $0x2c] sm:$0xff] %v233_v47 }
  0xa4   : > { %v230_v48 = vpop.permute.xlu1 %229  ;;  %v228_v49 = vpop.permute.xlu0 %227 }
  0xa5   : > { %v234_v50 = vsel %vm231_vm2, %v228_v49, %v230_v48  ;;  %v566_v54 = vld [vmem:[#allocation2 + $0x20] sm:$0xff] }
  0xa6   : > { %240 = vst [vmem:[#allocation2 + $0x34] sm:$0x3] %v234_v50 }
  0xa8   : > { %v256_v51 = vpop.permute.xlu1 %255  ;;  %v254_v52 = vpop.permute.xlu0 %253 }
  0xa9   : > { %v266_v53 = vsel %vm265_vm3, %v254_v52, %v256_v51  ;;  %v567_v55 = vld [vmem:[#allocation2 + $0x28] sm:$0xff] }
  0xaa   : > { %272 = vst [vmem:[#allocation2 + $0x36] sm:$0xff] %v266_v53  ;;  %v589_v56 = vpack.c.bf16 %v567_v55, %v566_v54 }
  0xac   : > { %v260_v57 = vpop.permute.xlu1 %259  ;;  %v258_v58 = vpop.permute.xlu0 %257  ;;  %901 = vmatpush1.bf16.msra.mxu0 %v589_v56  ;;  %1569 = vmatpush1.bf16.msra.mxu1 %v589_v56 }
  0xad   : > { %v267_v59 = vsel %vm265_vm3, %v258_v58, %v260_v57  ;;  %902 = vmatprep.subr.bf16.mxu0 %v1781_v0  ;;  %1557 = vmatprep.subr.bf16.mxu1 %v1781_v0 }
  0xae   : > { %273 = vst [vmem:[#allocation2 + $0x3e] sm:$0xff] %v267_v59 }
  0xb0   : > { %v264_v60 = vpop.permute.xlu1 %263  ;;  %v262_v61 = vpop.permute.xlu0 %261 }
  0xb1   : > { %v268_v62 = vsel %vm265_vm3, %v262_v61, %v264_v60  ;;  %v568_v3 = vld [vmem:[#allocation2 + $0x30] sm:$0xff] }
  0xb2   : > { %274 = vst [vmem:[#allocation2 + $0x46] sm:$0x3] %v268_v62 }
  0xb4   : > { %v290_v63 = vpop.permute.xlu1 %289  ;;  %v288_v1 = vpop.permute.xlu0 %287 }
  0xb5   : > { %v300_v2 = vsel %vm299_vm4, %v288_v1, %v290_v63  ;;  %v569_v4 = vld [vmem:[#allocation2 + $0x38] sm:$0xff] }
  0xb6   : > { %v590_v5 = vpack.c.bf16 %v569_v4, %v568_v3 }
  0xb8   : > { %v294_v6 = vpop.permute.xlu1 %293  ;;  %v292_v7 = vpop.permute.xlu0 %291  ;;  %903 = vmatpush1.bf16.msra.mxu0 %v590_v5  ;;  %1570 = vmatpush1.bf16.msra.mxu1 %v590_v5 }
  0xb9   : > { %v301_v8 = vsel %vm299_vm4, %v292_v7, %v294_v6  ;;  %904 = vmatprep.subr.bf16.mxu0 %v1781_v0  ;;  %1558 = vmatprep.subr.bf16.mxu1 %v1781_v0  ;;  %v570_v9 = vld [vmem:[#allocation2 + $0x40] sm:$0xff] }
  0xba   : > { %v591_v10 = vpack.c.bf16 %v300_v2, %v570_v9 }
  0xbc   : > { %v298_v11 = vpop.permute.xlu1 %297  ;;  %v296_v12 = vpop.permute.xlu0 %295  ;;  %905 = vmatpush1.bf16.msra.mxu0 %v591_v10  ;;  %1571 = vmatpush1.bf16.msra.mxu1 %v591_v10 }
  0xbd   : > { %v302_v13 = vsel %vm299_vm4, %v296_v12, %v298_v11  ;;  %906 = vmatprep.subr.bf16.mxu0 %v1781_v0  ;;  %1559 = vmatprep.subr.bf16.mxu1 %v1781_v0 }
  0xbe   : > { %308 = vst [vmem:[#allocation2 + $0x58] sm:$0x3] %v302_v13 }
  0xc0   : > { %v324_v14 = vpop.permute.xlu1 %323  ;;  %v322_v15 = vpop.permute.xlu0 %321 }
  0xc1   : > { %v334_v16 = vsel %vm333_vm5, %v322_v15, %v324_v14 }
  0xc2   : > { %340 = vst [vmem:[#allocation2 + $0x5a] sm:$0xff] %v334_v16 }
  0xc4   : > { %v328_v17 = vpop.permute.xlu1 %327  ;;  %v326_v18 = vpop.permute.xlu0 %325 }
  0xc5   : > { %v335_v19 = vsel %vm333_vm5, %v326_v18, %v328_v17 }
  0xc6   : > { %341 = vst [vmem:[#allocation2 + $0x62] sm:$0xff] %v335_v19 }
  0xc8   : > { %v332_v20 = vpop.permute.xlu1 %331  ;;  %v330_v21 = vpop.permute.xlu0 %329 }
  0xc9   : > { %v336_v22 = vsel %vm333_vm5, %v330_v21, %v332_v20  ;;  %v573_v23 = vld [vmem:[#allocation2 + $0x58] sm:$0xff] }
  0xca   : > { %342 = vst [vmem:[#allocation2 + $0x6a] sm:$0x3] %v336_v22  ;;  %v592_v24 = vpack.c.bf16 %v573_v23, %v301_v8  ;;  %v1793_v23 = vmov 65535  }
  0xcc   : > { %v358_v25 = vpop.permute.xlu1 %357  ;;  %v356_v26 = vpop.permute.xlu0 %355  ;;  %907 = vmatpush1.bf16.msra.mxu0 %v592_v24  ;;  %1572 = vmatpush1.bf16.msra.mxu1 %v592_v24  ;;  %v891_v24 = vsel %vm889_vm11, 4294967295, %v1793_v23 }
  0xcd   : > { %v368_v27 = vsel %vm367_vm6, %v356_v26, %v358_v25  ;;  %908 = vmatprep.subr.bf16.mxu0 %v1781_v0  ;;  %1560 = vmatprep.subr.bf16.mxu1 %v1781_v0  ;;  %v574_v34 = vld [vmem:[#allocation2 + $0x60] sm:$0xff]  ;;  %v892_v26 = vsel %vm890_vm12, %v891_v24, 0 }
  0xce   : > { %374 = vst [vmem:[#allocation2 + $0x6c] sm:$0xff] %v368_v27 }
  0xd0   : > { %v362_v28 = vpop.permute.xlu1 %361  ;;  %v360_v29 = vpop.permute.xlu0 %359 }
  0xd1   : > { %v369_v30 = vsel %vm367_vm6, %v360_v29, %v362_v28  ;;  %v1653_v29 = vld [vmem:[%s2348_s1] ss:$8 sps:$4 sm:$0xff]  }
  0xd2   : > { %375 = vst [vmem:[#allocation2 + $0x74] sm:$0xff] %v369_v30  ;;  %v1656_v30 = vld [vmem:[%s2348_s1 + $0xc0] ss:$8 sps:$4 sm:$0xff]  }
  0xd4   : > { %v366_v31 = vpop.permute.xlu1 %365  ;;  %v364_v32 = vpop.permute.xlu0 %363 }
  0xd5   : > { %v370_v33 = vsel %vm367_vm6, %v364_v32, %v366_v31  ;;  %v575_v35 = vld [vmem:[#allocation2 + $0x68] sm:$0xff]  ;;  %v1659_v31 = vld [vmem:[%s2348_s1 + $0x14] ss:$8 sps:$4 sm:$0xff]   ;;  %v1663_v32 = vld [vmem:[%s2348_s1 + $0x10] ss:$8 sps:$4 sm:$0xff]  }
  0xd6   : > { %376 = vst [vmem:[#allocation2 + $0x7c] sm:$0x3] %v370_v33  ;;  %v593_v36 = vpack.c.bf16 %v575_v35, %v574_v34  ;;  %v1664_v33 = vld [vmem:[%s2348_s1 + $0xd0] ss:$8 sps:$4 sm:$0xff]   ;;  %v1665_v34 = vld [vmem:[%s2348_s1 + $0x24] ss:$8 sps:$4 sm:$0xff]  }
  0xd7   : > { %v1667_v35 = vld [vmem:[%s2348_s1 + $0xe4] ss:$8 sps:$4 sm:$0xff]  }
  0xd8   : > { %v392_v37 = vpop.permute.xlu1 %391  ;;  %v390_v38 = vpop.permute.xlu0 %389  ;;  %909 = vmatpush1.bf16.msra.mxu0 %v593_v36  ;;  %1573 = vmatpush1.bf16.msra.mxu1 %v593_v36  ;;  %v1669_v36 = vld [vmem:[%s2348_s1 + $0x20] ss:$8 sps:$4 sm:$0xff]  }
  0xd9   : > { %v402_v39 = vsel %vm401_vm7, %v390_v38, %v392_v37  ;;  %910 = vmatprep.subr.bf16.mxu0 %v1781_v0  ;;  %1561 = vmatprep.subr.bf16.mxu1 %v1781_v0  ;;  %v576_v46 = vld [vmem:[#allocation2 + $0x70] sm:$0xff]  ;;  %v1670_v37 = vld [vmem:[%s2348_s1 + $0xe0] ss:$8 sps:$4 sm:$0xff]  }
  0xda   : > { %408 = vst [vmem:[#allocation2 + $0x7e] sm:$0xff] %v402_v39  ;;  %v1671_v38 = vld [vmem:[%s2348_s1 + $0x34] ss:$8 sps:$4 sm:$0xff]  }
  0xdb   : > { %v1673_v39 = vld [vmem:[%s2348_s1 + $0xf4] ss:$8 sps:$4 sm:$0xff]  }
  0xdc   : > { %v396_v40 = vpop.permute.xlu1 %395  ;;  %v394_v41 = vpop.permute.xlu0 %393 }
  0xdd   : > { %v403_v42 = vsel %vm401_vm7, %v394_v41, %v396_v40  ;;  %v1675_v40 = vld [vmem:[%s2348_s1 + $0x30] ss:$8 sps:$4 sm:$0xff]  }
  0xde   : > { %409 = vst [vmem:[#allocation2 + $0x86] sm:$0xff] %v403_v42  ;;  %v1676_v41 = vld [vmem:[%s2348_s1 + $0xf0] ss:$8 sps:$4 sm:$0xff]   ;;  %v1677_v42 = vld [vmem:[%s2348_s1 + $0x44] ss:$8 sps:$4 sm:$0xff]  }
  0xe0   : > { %v400_v43 = vpop.permute.xlu1 %399  ;;  %v398_v44 = vpop.permute.xlu0 %397 }
  0xe1   : > { %v404_v45 = vsel %vm401_vm7, %v398_v44, %v400_v43  ;;  %v577_v47 = vld [vmem:[#allocation2 + $0x78] sm:$0xff]  ;;  %v1679_v43 = vld [vmem:[%s2348_s1 + $0x104] ss:$8 sps:$4 sm:$0xff]   ;;  %v1681_v44 = vld [vmem:[%s2348_s1 + $0x40] ss:$8 sps:$4 sm:$0xff]  }
  0xe2   : > { %410 = vst [vmem:[#allocation2 + $0x8e] sm:$0x3] %v404_v45  ;;  %v594_v48 = vpack.c.bf16 %v577_v47, %v576_v46  ;;  %v1682_v45 = vld [vmem:[%s2348_s1 + $0x100] ss:$8 sps:$4 sm:$0xff]   ;;  %v1683_v46 = vld [vmem:[%s2348_s1 + $0x54] ss:$8 sps:$4 sm:$0xff]  }
  0xe3   : > { %v1685_v47 = vld [vmem:[%s2348_s1 + $0x114] ss:$8 sps:$4 sm:$0xff]  }
  0xe4   : > { %v426_v49 = vpop.permute.xlu1 %425  ;;  %v424_v50 = vpop.permute.xlu0 %423  ;;  %911 = vmatpush1.bf16.msra.mxu0 %v594_v48  ;;  %1574 = vmatpush1.bf16.msra.mxu1 %v594_v48  ;;  %v1687_v48 = vld [vmem:[%s2348_s1 + $0x50] ss:$8 sps:$4 sm:$0xff]  }
  0xe5   : > { %v436_v51 = vsel %vm435_vm8, %v424_v50, %v426_v49  ;;  %912 = vmatprep.subr.bf16.mxu0 %v1781_v0  ;;  %1562 = vmatprep.subr.bf16.mxu1 %v1781_v0  ;;  %v578_v55 = vld [vmem:[#allocation2 + $0x80] sm:$0xff]  ;;  %v1688_v49 = vld [vmem:[%s2348_s1 + $0x110] ss:$8 sps:$4 sm:$0xff]  }
  0xe6   : > { %v1689_v50 = vld [vmem:[%s2348_s1 + $0x64] ss:$8 sps:$4 sm:$0xff]  }
  0xe8   : > { %v430_v52 = vpop.permute.xlu1 %429  ;;  %v428_v53 = vpop.permute.xlu0 %427 }
  0xe9   : > { %v437_v54 = vsel %vm435_vm8, %v428_v53, %v430_v52  ;;  %v579_v56 = vld [vmem:[#allocation2 + $0x88] sm:$0xff] }
  0xea   : > { %v595_v57 = vpack.c.bf16 %v579_v56, %v578_v55  ;;  %v596_v61 = vpack.c.bf16 %v437_v54, %v436_v51  ;;  %v1691_v51 = vld [vmem:[%s2348_s1 + $0x124] ss:$8 sps:$4 sm:$0xff]   ;;  %v1693_v52 = vld [vmem:[%s2348_s1 + $0x60] ss:$8 sps:$4 sm:$0xff]   ;;  %v1695_v54 = vld [vmem:[%s2348_s1 + $0x74] ss:$8 sps:$4 sm:$0xff]  }
  0xeb   : > { %v1694_v53 = vld [vmem:[%s2348_s1 + $0x120] ss:$8 sps:$4 sm:$0xff]   ;;  %v1697_v55 = vld [vmem:[%s2348_s1 + $0x134] ss:$8 sps:$4 sm:$0xff]   ;;  %v1699_v56 = vld [vmem:[%s2348_s1 + $0x70] ss:$8 sps:$4 sm:$0xff]  }
  0xec   : > { %v434_v58 = vpop.permute.xlu1 %433  ;;  %v432_v59 = vpop.permute.xlu0 %431  ;;  %913 = vmatpush1.bf16.msra.mxu0 %v595_v57  ;;  %1575 = vmatpush1.bf16.msra.mxu1 %v595_v57  ;;  %v1700_v57 = vld [vmem:[%s2348_s1 + $0x130] ss:$8 sps:$4 sm:$0xff]  }
  0xed   : > { %v438_v60 = vsel %vm435_vm8, %v432_v59, %v434_v58  ;;  %914 = vmatprep.subr.bf16.mxu0 %v1781_v0  ;;  %1563 = vmatprep.subr.bf16.mxu1 %v1781_v0  ;;  %v1701_v58 = vld [vmem:[%s2348_s1 + $0x84] ss:$8 sps:$4 sm:$0xff]  }
  0xee   : > { %444 = vst [vmem:[#allocation2 + $0xa0] sm:$0x3] %v438_v60  ;;  %v1703_v59 = vld [vmem:[%s2348_s1 + $0x144] ss:$8 sps:$4 sm:$0xff]   ;;  %v1705_v60 = vld [vmem:[%s2348_s1 + $0x80] ss:$8 sps:$4 sm:$0xff]  }
  0xf0   : > { %v460_v62 = vpop.permute.xlu1 %459  ;;  %v458_v63 = vpop.permute.xlu0 %457  ;;  %915 = vmatpush1.bf16.msra.mxu0 %v596_v61  ;;  %1576 = vmatpush1.bf16.msra.mxu1 %v596_v61  ;;  %v1706_v61 = vld [vmem:[%s2348_s1 + $0x140] ss:$8 sps:$4 sm:$0xff]  }
  0xf1   : > { %v470_v1 = vsel %vm469_vm9, %v458_v63, %v460_v62  ;;  %916 = vmatprep.subr.bf16.mxu0 %v1781_v0  ;;  %1564 = vmatprep.subr.bf16.mxu1 %v1781_v0  ;;  %v1707_v62 = vld [vmem:[%s2348_s1 + $0x94] ss:$8 sps:$4 sm:$0xff]  }
  0xf2   : > { %476 = vst [vmem:[#allocation2 + $0xa2] sm:$0xff] %v470_v1  ;;  %v1709_v63 = vld [vmem:[%s2348_s1 + $0x154] ss:$8 sps:$4 sm:$0xff]   ;;  %v1711_v1 = vld [vmem:[%s2348_s1 + $0x90] ss:$8 sps:$4 sm:$0xff]  }
  0xf4   : > { %v464_v2 = vpop.permute.xlu1 %463  ;;  %v462_v3 = vpop.permute.xlu0 %461 }
  0xf5   : > { %v471_v4 = vsel %vm469_vm9, %v462_v3, %v464_v2  ;;  %v1712_v2 = vld [vmem:[%s2348_s1 + $0x150] ss:$8 sps:$4 sm:$0xff]   ;;  %v1713_v3 = vld [vmem:[%s2348_s1 + $0xa4] ss:$8 sps:$4 sm:$0xff]  }
  0xf6   : > { %477 = vst [vmem:[#allocation2 + $0xaa] sm:$0xff] %v471_v4  ;;  %v1715_v4 = vld [vmem:[%s2348_s1 + $0x164] ss:$8 sps:$4 sm:$0xff]  }
  0xf8   : > { %v468_v5 = vpop.permute.xlu1 %467  ;;  %v466_v6 = vpop.permute.xlu0 %465 }
  0xf9   : > { %v472_v7 = vsel %vm469_vm9, %v466_v6, %v468_v5  ;;  %v582_v11 = vld [vmem:[#allocation2 + $0xa0] sm:$0xff] }
  0xfa   : > { %478 = vst [vmem:[#allocation2 + $0xb2] sm:$0x3] %v472_v7  ;;  %v1717_v5 = vld [vmem:[%s2348_s1 + $0xa0] ss:$8 sps:$4 sm:$0xff]   ;;  %v1719_v7 = vld [vmem:[%s2348_s1 + $0xb4] ss:$8 sps:$4 sm:$0xff]  }
  0xfb   : > { %v1718_v6 = vld [vmem:[%s2348_s1 + $0x160] ss:$8 sps:$4 sm:$0xff]  }
  0xfc   : > { %v494_v8 = vpop.permute.xlu1 %493  ;;  %v492_v9 = vpop.permute.xlu0 %491 }
  0xfd   : > { %v504_v10 = vsel %vm503_vm10, %v492_v9, %v494_v8  ;;  %v583_v12 = vld [vmem:[#allocation2 + $0xa8] sm:$0xff]  ;;  %v1721_v8 = vld [vmem:[%s2348_s1 + $0x174] ss:$8 sps:$4 sm:$0xff]   ;;  %v1723_v9 = vld [vmem:[%s2348_s1 + $0xb0] ss:$8 sps:$4 sm:$0xff]  }
  0xfe   : > { %510 = vst [vmem:[#allocation2 + $0xb4] sm:$0xff] %v504_v10  ;;  %v597_v13 = vpack.c.bf16 %v583_v12, %v582_v11  ;;  %v1724_v10 = vld [vmem:[%s2348_s1 + $0x170] ss:$8 sps:$4 sm:$0xff]  }
 0x100   : > { %v498_v14 = vpop.permute.xlu1 %497  ;;  %v496_v15 = vpop.permute.xlu0 %495  ;;  %917 = vmatpush1.bf16.msra.mxu0 %v597_v13  ;;  %1577 = vmatpush1.bf16.msra.mxu1 %v597_v13 }
 0x101   : > { %v505_v16 = vsel %vm503_vm10, %v496_v15, %v498_v14  ;;  %918 = vmatprep.subr.bf16.mxu0 %v1781_v0  ;;  %1565 = vmatprep.subr.bf16.mxu1 %v1781_v0 }
 0x102   : > { %511 = vst [vmem:[#allocation2 + $0xbc] sm:$0xff] %v505_v16 }
 0x104   : > { %v502_v17 = vpop.permute.xlu1 %501  ;;  %v500_v18 = vpop.permute.xlu0 %499 }
 0x105   : > { %v506_v19 = vsel %vm503_vm10, %v500_v18, %v502_v17  ;;  %v584_v20 = vld [vmem:[#allocation2 + $0xb0] sm:$0xff] }
 0x106   : > { %512 = vst [vmem:[#allocation2 + $0xc4] sm:$0x3] %v506_v19 }
 0x109   : > { %v585_v21 = vld [vmem:[#allocation2 + $0xb8] sm:$0xff] }
 0x10a   : > { %v598_v22 = vpack.c.bf16 %v585_v21, %v584_v20 }
 0x10c   : > { %919 = vmatpush1.bf16.msra.mxu0 %v598_v22  ;;  %1578 = vmatpush1.bf16.msra.mxu1 %v598_v22 }
 0x10d   : > { %920 = vmatprep.subr.bf16.mxu0 %v1781_v0  ;;  %1566 = vmatprep.subr.bf16.mxu1 %v1781_v0  ;;  %v586_v25 = vld [vmem:[#allocation2 + $0xc0] sm:$0x7f]  ;;  %v1661_v0 = vld [vmem:[%s2348_s1 + $0xd4] ss:$8 sps:$4 sm:$0xff]  }
 0x10e   : > { %v599_v27 = vpack.c.bf16 %v586_v25, %v586_v25 }
 0x110   : > { %v894_v28 = vand.u32 %v892_v26, %v599_v27 }
 0x112   : > { %921 = vmatpush1.bf16.msra.mxu0 %v894_v28  ;;  %1579 = vmatpush1.bf16.msra.mxu1 %v894_v28 }
 0x115   : > { %929 = vmatmul.mubr.bf16.vlgmr.msra.gmra.mrb[0].mxu0 %v1653_v29  ;;  %1025 = vmatmul.mubr.bf16.vlgmr.msra.gmra.mrb[0].mxu1 %v1656_v30 }
 0x116   : > { %1528 = vmatprep.mubr.msk.bf16.mxu0 %vm816_vm1, %v1659_v31  ;;  %1540 = vmatprep.mubr.msk.bf16.mxu1 %vm816_vm1, %v1661_v0 }
 0x11d   : > { %937 = vmatmul.mubr.bf16.gmra.mrb[4].mxu0 %v1663_v32  ;;  %1033 = vmatmul.mubr.bf16.gmra.mrb[4].mxu1 %v1664_v33 }
 0x11e   : > { %1529 = vmatprep.mubr.msk.bf16.mxu0 %vm816_vm1, %v1665_v34  ;;  %1541 = vmatprep.mubr.msk.bf16.mxu1 %vm816_vm1, %v1667_v35 }
 0x125   : > { %945 = vmatmul.mubr.bf16.gmra.mrb[8].mxu0 %v1669_v36  ;;  %1041 = vmatmul.mubr.bf16.gmra.mrb[8].mxu1 %v1670_v37 }
 0x126   : > { %1530 = vmatprep.mubr.msk.bf16.mxu0 %vm816_vm1, %v1671_v38  ;;  %1542 = vmatprep.mubr.msk.bf16.mxu1 %vm816_vm1, %v1673_v39 }
 0x12d   : > { %953 = vmatmul.mubr.bf16.gmra.mrb[12].mxu0 %v1675_v40  ;;  %1049 = vmatmul.mubr.bf16.gmra.mrb[12].mxu1 %v1676_v41 }
 0x12e   : > { %1531 = vmatprep.mubr.msk.bf16.mxu0 %vm816_vm1, %v1677_v42  ;;  %1543 = vmatprep.mubr.msk.bf16.mxu1 %vm816_vm1, %v1679_v43 }
 0x135   : > { %961 = vmatmul.mubr.bf16.gmra.mrb[16].mxu0 %v1681_v44  ;;  %1057 = vmatmul.mubr.bf16.gmra.mrb[16].mxu1 %v1682_v45 }
 0x136   : > { %1532 = vmatprep.mubr.msk.bf16.mxu0 %vm816_vm1, %v1683_v46  ;;  %1544 = vmatprep.mubr.msk.bf16.mxu1 %vm816_vm1, %v1685_v47 }
 0x13d   : > { %969 = vmatmul.mubr.bf16.gmra.mrb[20].mxu0 %v1687_v48  ;;  %1065 = vmatmul.mubr.bf16.gmra.mrb[20].mxu1 %v1688_v49 }
 0x13e   : > { %1533 = vmatprep.mubr.msk.bf16.mxu0 %vm816_vm1, %v1689_v50  ;;  %1545 = vmatprep.mubr.msk.bf16.mxu1 %vm816_vm1, %v1691_v51 }
 0x145   : > { %977 = vmatmul.mubr.bf16.gmra.mrb[24].mxu0 %v1693_v52  ;;  %1073 = vmatmul.mubr.bf16.gmra.mrb[24].mxu1 %v1694_v53 }
 0x146   : > { %1534 = vmatprep.mubr.msk.bf16.mxu0 %vm816_vm1, %v1695_v54  ;;  %1546 = vmatprep.mubr.msk.bf16.mxu1 %vm816_vm1, %v1697_v55 }
 0x14d   : > { %985 = vmatmul.mubr.bf16.gmra.mrb[28].mxu0 %v1699_v56  ;;  %1081 = vmatmul.mubr.bf16.gmra.mrb[28].mxu1 %v1700_v57 }
 0x14e   : > { %1535 = vmatprep.mubr.msk.bf16.mxu0 %vm816_vm1, %v1701_v58  ;;  %1547 = vmatprep.mubr.msk.bf16.mxu1 %vm816_vm1, %v1703_v59 }
 0x155   : > { %993 = vmatmul.mubr.bf16.gmra.mrb[32].mxu0 %v1705_v60  ;;  %1089 = vmatmul.mubr.bf16.gmra.mrb[32].mxu1 %v1706_v61 }
 0x156   : > { %1536 = vmatprep.mubr.msk.bf16.mxu0 %vm816_vm1, %v1707_v62  ;;  %1548 = vmatprep.mubr.msk.bf16.mxu1 %vm816_vm1, %v1709_v63 }
 0x15d   : > { %1001 = vmatmul.mubr.bf16.gmra.mrb[36].mxu0 %v1711_v1  ;;  %1097 = vmatmul.mubr.bf16.gmra.mrb[36].mxu1 %v1712_v2 }
 0x15e   : > { %1537 = vmatprep.mubr.msk.bf16.mxu0 %vm816_vm1, %v1713_v3  ;;  %1549 = vmatprep.mubr.msk.bf16.mxu1 %vm816_vm1, %v1715_v4 }
 0x165   : > { %1009 = vmatmul.mubr.bf16.gmra.mrb[40].mxu0 %v1717_v5  ;;  %1105 = vmatmul.mubr.bf16.gmra.mrb[40].mxu1 %v1718_v6 }
 0x166   : > { %1538 = vmatprep.mubr.msk.bf16.mxu0 %vm816_vm1, %v1719_v7  ;;  %1550 = vmatprep.mubr.msk.bf16.mxu1 %vm816_vm1, %v1721_v8 }
 0x16d   : > { %1017 = vmatmul.mubr.bf16.gmra.mrb[44].mxu0 %v1723_v9  ;;  %1113 = vmatmul.mubr.bf16.gmra.mrb[44].mxu1 %v1724_v10 }
 0x1e8   : > { %v930_v11 = vpop.f32.mrb[0].mxu0  ;;  %v1026_v12 = vpop.f32.mrb[0].mxu1 }
 0x1e9   : > { %1121 = vst [vmem:[%s2171_s22] sm:$0xff] %v930_v11  ;;  %1145 = vst [vmem:[%s2171_s22 + $0xc0] sm:$0xff] %v1026_v12  ;;  %v932_v13 = vpop.f32.mrb[1].mxu0  ;;  %v1028_v14 = vpop.f32.mrb[1].mxu1 }
 0x1ea   : > { %v933_v15 = vpop.f32.mrb[2].mxu0  ;;  %v1029_v16 = vpop.f32.mrb[2].mxu1 }
 0x1eb   : > { %1122 = vst [vmem:[%s2171_s22 + $0x8] sm:$0xff] %v933_v15  ;;  %1146 = vst [vmem:[%s2171_s22 + $0xc8] sm:$0xff] %v1029_v16  ;;  %v935_v17 = vpop.f32.mrb[3].mxu0  ;;  %v1031_v18 = vpop.f32.mrb[3].mxu1 }
 0x1f0   : > { %v938_v19 = vpop.f32.mrb[4].mxu0  ;;  %v1034_v20 = vpop.f32.mrb[4].mxu1 }
 0x1f1   : > { %1123 = vst [vmem:[%s2171_s22 + $0x10] sm:$0xff] %v938_v19  ;;  %1147 = vst [vmem:[%s2171_s22 + $0xd0] sm:$0xff] %v1034_v20  ;;  %v940_v21 = vpop.f32.mrb[5].mxu0  ;;  %v1036_v22 = vpop.f32.mrb[5].mxu1 }
 0x1f2   : > { %v941_v23 = vpop.f32.mrb[6].mxu0  ;;  %v1037_v24 = vpop.f32.mrb[6].mxu1 }
 0x1f3   : > { %1124 = vst [vmem:[%s2171_s22 + $0x18] sm:$0xff] %v941_v23  ;;  %1148 = vst [vmem:[%s2171_s22 + $0xd8] sm:$0xff] %v1037_v24  ;;  %v943_v25 = vpop.f32.mrb[7].mxu0  ;;  %v1039_v26 = vpop.f32.mrb[7].mxu1 }
 0x1f8   : > { %v946_v27 = vpop.f32.mrb[8].mxu0  ;;  %v1042_v28 = vpop.f32.mrb[8].mxu1 }
 0x1f9   : > { %1125 = vst [vmem:[%s2171_s22 + $0x20] sm:$0xff] %v946_v27  ;;  %1149 = vst [vmem:[%s2171_s22 + $0xe0] sm:$0xff] %v1042_v28  ;;  %v948_v29 = vpop.f32.mrb[9].mxu0  ;;  %v1044_v30 = vpop.f32.mrb[9].mxu1 }
 0x1fa   : > { %v949_v31 = vpop.f32.mrb[10].mxu0  ;;  %v1045_v0 = vpop.f32.mrb[10].mxu1 }
 0x1fb   : > { %1126 = vst [vmem:[%s2171_s22 + $0x28] sm:$0xff] %v949_v31  ;;  %1150 = vst [vmem:[%s2171_s22 + $0xe8] sm:$0xff] %v1045_v0  ;;  %v951_v32 = vpop.f32.mrb[11].mxu0  ;;  %v1047_v33 = vpop.f32.mrb[11].mxu1 }
 0x200   : > { %v954_v34 = vpop.f32.mrb[12].mxu0  ;;  %v1050_v35 = vpop.f32.mrb[12].mxu1 }
 0x201   : > { %1127 = vst [vmem:[%s2171_s22 + $0x30] sm:$0xff] %v954_v34  ;;  %1151 = vst [vmem:[%s2171_s22 + $0xf0] sm:$0xff] %v1050_v35  ;;  %v956_v36 = vpop.f32.mrb[13].mxu0  ;;  %v1052_v37 = vpop.f32.mrb[13].mxu1 }
 0x202   : > { %v957_v38 = vpop.f32.mrb[14].mxu0  ;;  %v1053_v39 = vpop.f32.mrb[14].mxu1 }
 0x203   : > { %1128 = vst [vmem:[%s2171_s22 + $0x38] sm:$0xff] %v957_v38  ;;  %1152 = vst [vmem:[%s2171_s22 + $0xf8] sm:$0xff] %v1053_v39  ;;  %v959_v40 = vpop.f32.mrb[15].mxu0  ;;  %v1055_v41 = vpop.f32.mrb[15].mxu1 }
 0x208   : > { %v962_v42 = vpop.f32.mrb[16].mxu0  ;;  %v1058_v43 = vpop.f32.mrb[16].mxu1 }
 0x209   : > { %1129 = vst [vmem:[%s2171_s22 + $0x40] sm:$0xff] %v962_v42  ;;  %1153 = vst [vmem:[%s2171_s22 + $0x100] sm:$0xff] %v1058_v43  ;;  %v964_v44 = vpop.f32.mrb[17].mxu0  ;;  %v1060_v45 = vpop.f32.mrb[17].mxu1  ;;  %v1301_v42 = vld [vmem:[%s2171_s22] sm:$0xff] (%p1855_p5)  ;;  %v1303_v43 = vld [vmem:[%s2171_s22 + $0x8] sm:$0xff] (%p1855_p5) }
 0x20a   : > { %v965_v46 = vpop.f32.mrb[18].mxu0  ;;  %v1061_v47 = vpop.f32.mrb[18].mxu1  ;;  %v1305_v44 = vld [vmem:[%s2171_s22 + $0x10] sm:$0xff] (%p1855_p5)  ;;  %v1307_v45 = vld [vmem:[%s2171_s22 + $0x18] sm:$0xff] (%p1855_p5)  ;;  %1302 = vst [vmem:[%s2240_s12] sm:$0xff] (%p1855_p5), %v1301_v42  ;;  %1304 = vst [vmem:[%s2240_s12 + $0x10] sm:$0xff] (%p1855_p5), %v1303_v43 }
 0x20b   : > { %1130 = vst [vmem:[%s2171_s22 + $0x48] sm:$0xff] %v965_v46  ;;  %1154 = vst [vmem:[%s2171_s22 + $0x108] sm:$0xff] %v1061_v47  ;;  %v967_v48 = vpop.f32.mrb[19].mxu0  ;;  %v1063_v49 = vpop.f32.mrb[19].mxu1  ;;  %v1309_v46 = vld [vmem:[%s2171_s22 + $0x20] sm:$0xff] (%p1855_p5)  ;;  %v1311_v47 = vld [vmem:[%s2171_s22 + $0x28] sm:$0xff] (%p1855_p5) }
 0x20c   : > { %v1313_v48 = vld [vmem:[%s2171_s22 + $0x30] sm:$0xff] (%p1855_p5)  ;;  %v1315_v49 = vld [vmem:[%s2171_s22 + $0x38] sm:$0xff] (%p1855_p5)  ;;  %1306 = vst [vmem:[%s2240_s12 + $0x20] sm:$0xff] (%p1855_p5), %v1305_v44  ;;  %1308 = vst [vmem:[%s2240_s12 + $0x30] sm:$0xff] (%p1855_p5), %v1307_v45 }
 0x20d   : > { %1310 = vst [vmem:[%s2240_s12 + $0x40] sm:$0xff] (%p1855_p5), %v1309_v46  ;;  %1312 = vst [vmem:[%s2240_s12 + $0x50] sm:$0xff] (%p1855_p5), %v1311_v47 }
 0x20e   : > { %1314 = vst [vmem:[%s2240_s12 + $0x60] sm:$0xff] (%p1855_p5), %v1313_v48  ;;  %1316 = vst [vmem:[%s2240_s12 + $0x70] sm:$0xff] (%p1855_p5), %v1315_v49 }
 0x210   : > { %v970_v50 = vpop.f32.mrb[20].mxu0  ;;  %v1066_v51 = vpop.f32.mrb[20].mxu1 }
 0x211   : > { %1131 = vst [vmem:[%s2171_s22 + $0x50] sm:$0xff] %v970_v50  ;;  %1155 = vst [vmem:[%s2171_s22 + $0x110] sm:$0xff] %v1066_v51  ;;  %v972_v52 = vpop.f32.mrb[21].mxu0  ;;  %v1068_v53 = vpop.f32.mrb[21].mxu1  ;;  %v1317_v50 = vld [vmem:[%s2171_s22 + $0x40] sm:$0xff] (%p1855_p5) }
 0x212   : > { %v973_v54 = vpop.f32.mrb[22].mxu0  ;;  %v1069_v55 = vpop.f32.mrb[22].mxu1  ;;  %v1319_v51 = vld [vmem:[%s2171_s22 + $0x48] sm:$0xff] (%p1855_p5)  ;;  %1318 = vst [vmem:[%s2240_s12 + $0x80] sm:$0xff] (%p1855_p5), %v1317_v50 }
 0x213   : > { %1132 = vst [vmem:[%s2171_s22 + $0x58] sm:$0xff] %v973_v54  ;;  %1156 = vst [vmem:[%s2171_s22 + $0x118] sm:$0xff] %v1069_v55  ;;  %v975_v56 = vpop.f32.mrb[23].mxu0  ;;  %v1071_v57 = vpop.f32.mrb[23].mxu1 }
 0x214   : > { %1320 = vst [vmem:[%s2240_s12 + $0x90] sm:$0xff] (%p1855_p5), %v1319_v51 }
 0x218   : > { %v978_v58 = vpop.f32.mrb[24].mxu0  ;;  %v1074_v59 = vpop.f32.mrb[24].mxu1  ;;  %v1321_v52 = vld [vmem:[%s2171_s22 + $0x50] sm:$0xff] (%p1855_p5) }
 0x219   : > { %1133 = vst [vmem:[%s2171_s22 + $0x60] sm:$0xff] %v978_v58  ;;  %1157 = vst [vmem:[%s2171_s22 + $0x120] sm:$0xff] %v1074_v59  ;;  %v980_v60 = vpop.f32.mrb[25].mxu0  ;;  %v1076_v61 = vpop.f32.mrb[25].mxu1 }
 0x21a   : > { %v981_v62 = vpop.f32.mrb[26].mxu0  ;;  %v1077_v63 = vpop.f32.mrb[26].mxu1  ;;  %v1323_v53 = vld [vmem:[%s2171_s22 + $0x58] sm:$0xff] (%p1855_p5)  ;;  %1322 = vst [vmem:[%s2240_s12 + $0xa0] sm:$0xff] (%p1855_p5), %v1321_v52 }
 0x21b   : > { %1134 = vst [vmem:[%s2171_s22 + $0x68] sm:$0xff] %v981_v62  ;;  %1158 = vst [vmem:[%s2171_s22 + $0x128] sm:$0xff] %v1077_v63  ;;  %v983_v1 = vpop.f32.mrb[27].mxu0  ;;  %v1079_v2 = vpop.f32.mrb[27].mxu1 }
 0x21c   : > { %1324 = vst [vmem:[%s2240_s12 + $0xb0] sm:$0xff] (%p1855_p5), %v1323_v53 }
 0x220   : > { %v986_v3 = vpop.f32.mrb[28].mxu0  ;;  %v1082_v4 = vpop.f32.mrb[28].mxu1  ;;  %v1325_v54 = vld [vmem:[%s2171_s22 + $0x60] sm:$0xff] (%p1855_p5) }
 0x221   : > { %1135 = vst [vmem:[%s2171_s22 + $0x70] sm:$0xff] %v986_v3  ;;  %1159 = vst [vmem:[%s2171_s22 + $0x130] sm:$0xff] %v1082_v4  ;;  %v988_v5 = vpop.f32.mrb[29].mxu0  ;;  %v1084_v6 = vpop.f32.mrb[29].mxu1  ;;  %v1349_v3 = vld [vmem:[%s2171_s22 + $0xc0] sm:$0xff] (%p1855_p5)  ;;  %v1351_v4 = vld [vmem:[%s2171_s22 + $0xc8] sm:$0xff] (%p1855_p5) }
 0x222   : > { %v989_v7 = vpop.f32.mrb[30].mxu0  ;;  %v1085_v8 = vpop.f32.mrb[30].mxu1  ;;  %v1327_v55 = vld [vmem:[%s2171_s22 + $0x68] sm:$0xff] (%p1855_p5)  ;;  %1326 = vst [vmem:[%s2240_s12 + $0xc0] sm:$0xff] (%p1855_p5), %v1325_v54  ;;  %v1353_v5 = vld [vmem:[%s2171_s22 + $0xd0] sm:$0xff] (%p1855_p5)  ;;  %1350 = vst [vmem:[%s2240_s12 + $0x180] sm:$0xff] (%p1855_p5), %v1349_v3 }
 0x223   : > { %1136 = vst [vmem:[%s2171_s22 + $0x78] sm:$0xff] %v989_v7  ;;  %1160 = vst [vmem:[%s2171_s22 + $0x138] sm:$0xff] %v1085_v8  ;;  %v991_v9 = vpop.f32.mrb[31].mxu0  ;;  %v1087_v10 = vpop.f32.mrb[31].mxu1  ;;  %v1355_v6 = vld [vmem:[%s2171_s22 + $0xd8] sm:$0xff] (%p1855_p5)  ;;  %v1357_v7 = vld [vmem:[%s2171_s22 + $0xe0] sm:$0xff] (%p1855_p5) }
 0x224   : > { %1328 = vst [vmem:[%s2240_s12 + $0xd0] sm:$0xff] (%p1855_p5), %v1327_v55  ;;  %1352 = vst [vmem:[%s2240_s12 + $0x190] sm:$0xff] (%p1855_p5), %v1351_v4  ;;  %v1359_v8 = vld [vmem:[%s2171_s22 + $0xe8] sm:$0xff] (%p1855_p5)  ;;  %v1361_v9 = vld [vmem:[%s2171_s22 + $0xf0] sm:$0xff] (%p1855_p5) }
 0x225   : > { %1354 = vst [vmem:[%s2240_s12 + $0x1a0] sm:$0xff] (%p1855_p5), %v1353_v5  ;;  %1356 = vst [vmem:[%s2240_s12 + $0x1b0] sm:$0xff] (%p1855_p5), %v1355_v6  ;;  %v1363_v10 = vld [vmem:[%s2171_s22 + $0xf8] sm:$0xff] (%p1855_p5) }
 0x226   : > { %1358 = vst [vmem:[%s2240_s12 + $0x1c0] sm:$0xff] (%p1855_p5), %v1357_v7  ;;  %1360 = vst [vmem:[%s2240_s12 + $0x1d0] sm:$0xff] (%p1855_p5), %v1359_v8 }
 0x227   : > { %1362 = vst [vmem:[%s2240_s12 + $0x1e0] sm:$0xff] (%p1855_p5), %v1361_v9  ;;  %1364 = vst [vmem:[%s2240_s12 + $0x1f0] sm:$0xff] (%p1855_p5), %v1363_v10 }
 0x228   : > { %v994_v11 = vpop.f32.mrb[32].mxu0  ;;  %v1090_v12 = vpop.f32.mrb[32].mxu1  ;;  %v1329_v56 = vld [vmem:[%s2171_s22 + $0x70] sm:$0xff] (%p1855_p5) }
 0x229   : > { %1137 = vst [vmem:[%s2171_s22 + $0x80] sm:$0xff] %v994_v11  ;;  %1161 = vst [vmem:[%s2171_s22 + $0x140] sm:$0xff] %v1090_v12  ;;  %v996_v13 = vpop.f32.mrb[33].mxu0  ;;  %v1092_v14 = vpop.f32.mrb[33].mxu1  ;;  %v1365_v11 = vld [vmem:[%s2171_s22 + $0x100] sm:$0xff] (%p1855_p5)  ;;  %v1367_v12 = vld [vmem:[%s2171_s22 + $0x108] sm:$0xff] (%p1855_p5) }
 0x22a   : > { %v997_v15 = vpop.f32.mrb[34].mxu0  ;;  %v1093_v16 = vpop.f32.mrb[34].mxu1  ;;  %1330 = vst [vmem:[%s2240_s12 + $0xe0] sm:$0xff] (%p1855_p5), %v1329_v56  ;;  %v1331_v57 = vld [vmem:[%s2171_s22 + $0x78] sm:$0xff] (%p1855_p5)  ;;  %1366 = vst [vmem:[%s2240_s12 + $0x200] sm:$0xff] (%p1855_p5), %v1365_v11  ;;  %v1369_v13 = vld [vmem:[%s2171_s22 + $0x110] sm:$0xff] (%p1855_p5) }
 0x22b   : > { %1138 = vst [vmem:[%s2171_s22 + $0x88] sm:$0xff] %v997_v15  ;;  %1162 = vst [vmem:[%s2171_s22 + $0x148] sm:$0xff] %v1093_v16  ;;  %v999_v17 = vpop.f32.mrb[35].mxu0  ;;  %v1095_v18 = vpop.f32.mrb[35].mxu1  ;;  %v1371_v14 = vld [vmem:[%s2171_s22 + $0x118] sm:$0xff] (%p1855_p5)  ;;  %v1373_v15 = vld [vmem:[%s2171_s22 + $0x120] sm:$0xff] (%p1855_p5) }
 0x22c   : > { %1332 = vst [vmem:[%s2240_s12 + $0xf0] sm:$0xff] (%p1855_p5), %v1331_v57  ;;  %1368 = vst [vmem:[%s2240_s12 + $0x210] sm:$0xff] (%p1855_p5), %v1367_v12  ;;  %v1375_v16 = vld [vmem:[%s2171_s22 + $0x128] sm:$0xff] (%p1855_p5)  ;;  %v1377_v17 = vld [vmem:[%s2171_s22 + $0x130] sm:$0xff] (%p1855_p5) }
 0x22d   : > { %1370 = vst [vmem:[%s2240_s12 + $0x220] sm:$0xff] (%p1855_p5), %v1369_v13  ;;  %1372 = vst [vmem:[%s2240_s12 + $0x230] sm:$0xff] (%p1855_p5), %v1371_v14  ;;  %v1379_v18 = vld [vmem:[%s2171_s22 + $0x138] sm:$0xff] (%p1855_p5) }
 0x22e   : > { %1374 = vst [vmem:[%s2240_s12 + $0x240] sm:$0xff] (%p1855_p5), %v1373_v15  ;;  %1376 = vst [vmem:[%s2240_s12 + $0x250] sm:$0xff] (%p1855_p5), %v1375_v16 }
 0x22f   : > { %1378 = vst [vmem:[%s2240_s12 + $0x260] sm:$0xff] (%p1855_p5), %v1377_v17  ;;  %1380 = vst [vmem:[%s2240_s12 + $0x270] sm:$0xff] (%p1855_p5), %v1379_v18 }
 0x230   : > { %v1002_v19 = vpop.f32.mrb[36].mxu0  ;;  %v1098_v20 = vpop.f32.mrb[36].mxu1  ;;  %v1333_v58 = vld [vmem:[%s2171_s22 + $0x80] sm:$0xff] (%p1855_p5) }
 0x231   : > { %1139 = vst [vmem:[%s2171_s22 + $0x90] sm:$0xff] %v1002_v19  ;;  %1163 = vst [vmem:[%s2171_s22 + $0x150] sm:$0xff] %v1098_v20  ;;  %v1004_v21 = vpop.f32.mrb[37].mxu0  ;;  %v1100_v22 = vpop.f32.mrb[37].mxu1  ;;  %v1381_v19 = vld [vmem:[%s2171_s22 + $0x140] sm:$0xff] (%p1855_p5) }
 0x232   : > { %v1005_v23 = vpop.f32.mrb[38].mxu0  ;;  %v1101_v24 = vpop.f32.mrb[38].mxu1  ;;  %v1335_v59 = vld [vmem:[%s2171_s22 + $0x88] sm:$0xff] (%p1855_p5)  ;;  %1334 = vst [vmem:[%s2240_s12 + $0x100] sm:$0xff] (%p1855_p5), %v1333_v58  ;;  %1382 = vst [vmem:[%s2240_s12 + $0x280] sm:$0xff] (%p1855_p5), %v1381_v19 }
 0x233   : > { %1140 = vst [vmem:[%s2171_s22 + $0x98] sm:$0xff] %v1005_v23  ;;  %1164 = vst [vmem:[%s2171_s22 + $0x158] sm:$0xff] %v1101_v24  ;;  %v1007_v25 = vpop.f32.mrb[39].mxu0  ;;  %v1103_v26 = vpop.f32.mrb[39].mxu1  ;;  %v1383_v20 = vld [vmem:[%s2171_s22 + $0x148] sm:$0xff] (%p1855_p5) }
 0x234   : > { %1336 = vst [vmem:[%s2240_s12 + $0x110] sm:$0xff] (%p1855_p5), %v1335_v59  ;;  %1384 = vst [vmem:[%s2240_s12 + $0x290] sm:$0xff] (%p1855_p5), %v1383_v20 }
 0x238   : > { %v1010_v27 = vpop.f32.mrb[40].mxu0  ;;  %v1106_v28 = vpop.f32.mrb[40].mxu1  ;;  %v1337_v60 = vld [vmem:[%s2171_s22 + $0x90] sm:$0xff] (%p1855_p5) }
 0x239   : > { %1141 = vst [vmem:[%s2171_s22 + $0xa0] sm:$0xff] %v1010_v27  ;;  %1165 = vst [vmem:[%s2171_s22 + $0x160] sm:$0xff] %v1106_v28  ;;  %v1012_v29 = vpop.f32.mrb[41].mxu0  ;;  %v1108_v30 = vpop.f32.mrb[41].mxu1  ;;  %v1385_v21 = vld [vmem:[%s2171_s22 + $0x150] sm:$0xff] (%p1855_p5) }
 0x23a   : > { %v1013_v31 = vpop.f32.mrb[42].mxu0  ;;  %v1109_v0 = vpop.f32.mrb[42].mxu1  ;;  %v1339_v61 = vld [vmem:[%s2171_s22 + $0x98] sm:$0xff] (%p1855_p5)  ;;  %1338 = vst [vmem:[%s2240_s12 + $0x120] sm:$0xff] (%p1855_p5), %v1337_v60  ;;  %1386 = vst [vmem:[%s2240_s12 + $0x2a0] sm:$0xff] (%p1855_p5), %v1385_v21 }
 0x23b   : > { %1142 = vst [vmem:[%s2171_s22 + $0xa8] sm:$0xff] %v1013_v31  ;;  %1166 = vst [vmem:[%s2171_s22 + $0x168] sm:$0xff] %v1109_v0  ;;  %v1015_v32 = vpop.f32.mrb[43].mxu0  ;;  %v1111_v33 = vpop.f32.mrb[43].mxu1  ;;  %v1387_v22 = vld [vmem:[%s2171_s22 + $0x158] sm:$0xff] (%p1855_p5) }
 0x23c   : > { %1340 = vst [vmem:[%s2240_s12 + $0x130] sm:$0xff] (%p1855_p5), %v1339_v61  ;;  %1388 = vst [vmem:[%s2240_s12 + $0x2b0] sm:$0xff] (%p1855_p5), %v1387_v22 }
 0x23d   : > { %1175 = sbr.rel (!%p1855_p5) target bundleno = 589 (0x24d), region = 32 }
 0x240   : > { %v1018_v34 = vpop.f32.mrb[44].mxu0  ;;  %v1114_v35 = vpop.f32.mrb[44].mxu1  ;;  %v1341_v62 = vld [vmem:[%s2171_s22 + $0xa0] sm:$0xff] (%p1855_p5) }
 0x241   : > { %1143 = vst [vmem:[%s2171_s22 + $0xb0] sm:$0xff] %v1018_v34  ;;  %1167 = vst [vmem:[%s2171_s22 + $0x170] sm:$0xff] %v1114_v35  ;;  %v1020_v36 = vpop.f32.mrb[45].mxu0  ;;  %v1116_v37 = vpop.f32.mrb[45].mxu1  ;;  %v1389_v23 = vld [vmem:[%s2171_s22 + $0x160] sm:$0xff] (%p1855_p5) }
 0x242   : > { %v1021_v38 = vpop.f32.mrb[46].mxu0  ;;  %v1117_v39 = vpop.f32.mrb[46].mxu1  ;;  %1342 = vst [vmem:[%s2240_s12 + $0x140] sm:$0xff] (%p1855_p5), %v1341_v62  ;;  %v1343_v63 = vld [vmem:[%s2171_s22 + $0xa8] sm:$0xff] (%p1855_p5)  ;;  %1390 = vst [vmem:[%s2240_s12 + $0x2c0] sm:$0xff] (%p1855_p5), %v1389_v23 }
 0x243   : > { %1144 = vst [vmem:[%s2171_s22 + $0xb8] sm:$0xff] %v1021_v38  ;;  %1168 = vst [vmem:[%s2171_s22 + $0x178] sm:$0xff] %v1117_v39  ;;  %v1023_v40 = vpop.f32.mrb[47].mxu0  ;;  %v1119_v41 = vpop.f32.mrb[47].mxu1  ;;  %v1391_v24 = vld [vmem:[%s2171_s22 + $0x168] sm:$0xff] (%p1855_p5) }
 0x244   : > { %1344 = vst [vmem:[%s2240_s12 + $0x150] sm:$0xff] %v1343_v63  ;;  %1392 = vst [vmem:[%s2240_s12 + $0x2d0] sm:$0xff] %v1391_v24 }
 0x248   : > { %v1345_v1 = vld [vmem:[%s2171_s22 + $0xb0] sm:$0xff] }
 0x249   : > { %1346 = vst [vmem:[%s2240_s12 + $0x160] sm:$0xff] %v1345_v1  ;;  %v1393_v25 = vld [vmem:[%s2171_s22 + $0x170] sm:$0xff] }
 0x24a   : > { %v1347_v2 = vld [vmem:[%s2171_s22 + $0xb8] sm:$0xff]  ;;  %1394 = vst [vmem:[%s2240_s12 + $0x2e0] sm:$0xff] %v1393_v25 }
 0x24b   : > { %1348 = vst [vmem:[%s2240_s12 + $0x170] sm:$0xff] %v1347_v2  ;;  %v1395_v26 = vld [vmem:[%s2171_s22 + $0x178] sm:$0xff] }
 0x24c   : > { %1396 = vst [vmem:[%s2240_s12 + $0x2f0] sm:$0xff] %v1395_v26 }
 0x24d PF: > { %s12_s15 = sadd.s32 1, %s1779_s15   ;;  %s2351_s9 = smov %s1759_s10 }
 0x24e   : > { %p9_p11 = scmp.ge.s32.totalorder %s12_s15, 6   ;;  %s2352_s10 = smov %s1866_s24 }
 0x24f   : > { %s2353_s11 = smov %s1771_s13  ;;  %s2354_s12 = smov %s1775_s14 }
 0x250   : > { %s2355_s13 = smov %s2358_s16  ;;  %s2356_s14 = smov %s2362_s17 }
 0x251   :  { %11 = sbr.rel (!%p9_p11) target bundleno = 4 (0x4), region = 96 }

</bundles_post_ra>
